<compile_context>
chip_gen: v5e
topology: v5e:2x2
jax: 0.10.0
libtpu: 0.0.40
codegen_flags: <defaults>
</compile_context>

<pallas_src>
import functools
import math

import jax
import jax.numpy as jnp
from jax.experimental import pallas as pl
from jax.experimental.pallas import tpu as pltpu


def _block_diag(w):
    """(n, din, dout) -> block-diagonal (n*din, n*dout). Tiny, parameter-sized."""
    n, din, dout = w.shape
    eye = jnp.eye(n, dtype=w.dtype)
    return (w[:, :, None, :] * eye[:, None, :, None]).reshape(n * din, n * dout)


def _batch_tile(batch):
    """Pick a batch tile: multiple of 8 (sublane rule), >=2 tiles when possible
    (v7x megacore), capped so double-buffered tiles stay well inside VMEM."""
    if batch < 16:
        return batch                       # full-dim block (always legal)
    half = -(-batch // 2)
    bt = ((half + 7) // 8) * 8
    return min(bt, 512)


def _select_attention_kernel(q_ref, k_ref, wq_ref, wk_ref, bq_ref, bk_ref,
                             o_ref, *, nq, nk, cm, inv_temp):
    # q_ref: (bt, nq*cq)   wq_ref: (nq*cq, nq*cm)   bq_ref: (1, nq*cm)
    # k_ref: (bt, nk*ck)   wk_ref: (nk*ck, nk*cm)   bk_ref: (1, nk*cm)
    # o_ref: (bt, nq*nk)
    r = jnp.dot(q_ref[...], wq_ref[...],
                preferred_element_type=jnp.float32) + bq_ref[...]     # (bt, nq*cm)
    w = jnp.dot(k_ref[...], wk_ref[...],
                preferred_element_type=jnp.float32) + bk_ref[...]     # (bt, nk*cm)

    # Pairwise scores: a[b, i*nk + j] = <r_i[b], w_j[b]> * inv_temp.
    # Lane slices + per-row (lane) reductions; nq*nk is small and static.
    w_blocks = [w[:, j * cm:(j + 1) * cm] for j in range(nk)]          # (bt, cm)
    rows = []
    for i in range(nq):
        r_i = r[:, i * cm:(i + 1) * cm]                                # (bt, cm)
        cols = [jnp.sum(r_i * w_blocks[j], axis=-1, keepdims=True)     # (bt, 1)
                for j in range(nk)]
        rows.append(jnp.concatenate(cols, axis=-1))                    # (bt, nk)
    a = jnp.concatenate(rows, axis=-1) * inv_temp                      # (bt, nq*nk)
    o_ref[...] = a.astype(o_ref.dtype)


def select_attention(q, k, wq, bq, wk, bk):
    """q: (B, nq, cq), k: (B, nk, ck), wq: (nq, cq, cm), bq: (nq, cm) or None,
    wk: (nk, ck, cm), bk: (nk, cm) or None  ->  a: (B, nq, nk)."""
    batch, nq, cq = q.shape
    batch_k, nk, ck = k.shape
    assert batch == batch_k
    nq_w, cq_w, cm = wq.shape
    nk_w, ck_w, cm_k = wk.shape
    assert (nq_w, cq_w) == (nq, cq) and (nk_w, ck_w) == (nk, ck) and cm == cm_k
    inv_temp = 1.0 / math.sqrt(cm)

    # Merged bias / no-bias path.
    if bq is None:
        bq = jnp.zeros((nq, cm), dtype=wq.dtype)
    if bk is None:
        bk = jnp.zeros((nk, cm), dtype=wk.dtype)

    # Host-side prep: tiny parameter-sized ops + free contiguous reshapes of
    # the activations (no permutes -> no extra HBM round trips for q/k).
    wq_bd = _block_diag(wq)                    # (nq*cq, nq*cm)
    wk_bd = _block_diag(wk)                    # (nk*ck, nk*cm)
    bq2 = bq.reshape(1, nq * cm)
    bk2 = bk.reshape(1, nk * cm)
    q2 = q.reshape(batch, nq * cq)
    k2 = k.reshape(batch, nk * ck)

    bt = _batch_tile(batch)
    grid = (pl.cdiv(batch, bt),)

    kernel = functools.partial(_select_attention_kernel,
                               nq=nq, nk=nk, cm=cm, inv_temp=inv_temp)

    flops = 2 * batch * (nq * cq * nq * cm + nk * ck * nk * cm + nq * nk * cm)
    bytes_accessed = 4 * (q2.size + k2.size + wq_bd.size + wk_bd.size
                          + bq2.size + bk2.size + batch * nq * nk)

    out = pl.pallas_call(
        kernel,
        out_shape=jax.ShapeDtypeStruct((batch, nq * nk), q.dtype),
        grid_spec=pltpu.PrefetchScalarGridSpec(
            num_scalar_prefetch=0,
            grid=grid,
            in_specs=[
                pl.BlockSpec((bt, nq * cq), lambda t: (t, 0)),       # q tile
                pl.BlockSpec((bt, nk * ck), lambda t: (t, 0)),       # k tile
                pl.BlockSpec((nq * cq, nq * cm), lambda t: (0, 0)),  # Wq (reused)
                pl.BlockSpec((nk * ck, nk * cm), lambda t: (0, 0)),  # Wk (reused)
                pl.BlockSpec((1, nq * cm), lambda t: (0, 0)),        # bq
                pl.BlockSpec((1, nk * cm), lambda t: (0, 0)),        # bk
            ],
            out_specs=pl.BlockSpec((bt, nq * nk), lambda t: (t, 0)),
        ),
        compiler_params=pltpu.CompilerParams(
            dimension_semantics=("parallel",)),
        cost_estimate=pl.CostEstimate(flops=flops, transcendentals=0,
                                      bytes_accessed=bytes_accessed),
    )(q2, k2, wq_bd, wk_bd, bq2, bk2)

    return out.reshape(batch, nq, nk)          # contiguous -> free reshape


def init_select_attention_params(key, cq, ck, cm=16, nq=5, nk=5):
    """uniform(-1/sqrt(cm), 1/sqrt(cm)) init matching GLinear.__init__."""
    a = 1.0 / math.sqrt(cm)
    k1, k2, k3, k4 = jax.random.split(key, 4)
    wq = jax.random.uniform(k1, (nq, cq, cm), minval=-a, maxval=a, dtype=jnp.float32)
    bq = jax.random.uniform(k2, (nq, cm), minval=-a, maxval=a, dtype=jnp.float32)
    wk = jax.random.uniform(k3, (nk, ck, cm), minval=-a, maxval=a, dtype=jnp.float32)
    bk = jax.random.uniform(k4, (nk, cm), minval=-a, maxval=a, dtype=jnp.float32)
    return wq, bq, wk, bk


if __name__ == "__main__":
    key = jax.random.PRNGKey(0)
    kq, kk, kp = jax.random.split(key, 3)

    batch, nq, nk, cq, ck, cm = 2, 5, 5, 32, 32, 16
    q = jax.random.normal(kq, (batch, nq, cq), dtype=jnp.float32)
    k = jax.random.normal(kk, (batch, nk, ck), dtype=jnp.float32)
    wq, bq, wk, bk = init_select_attention_params(kp, cq, ck, cm, nq, nk)

    a = select_attention(q, k, wq, bq, wk, bk)
    jax.block_until_ready(a)

    # Plain-JAX reference mirroring GLinear(q), GLinear(k), bmm / sqrt(cm).
    r_ref = jnp.einsum("bqc,qcm->bqm", q, wq) + bq[None]
    w_ref = jnp.einsum("bkc,kcm->bkm", k, wk) + bk[None]
    a_ref = jnp.einsum("bqm,bkm->bqk", r_ref, w_ref) / math.sqrt(cm)

    assert a.shape == (batch, nq, nk)
    assert jnp.allclose(a, a_ref, atol=1e-4, rtol=1e-4), float(
        jnp.max(jnp.abs(a - a_ref)))

    print("KERNEL_OK")
</pallas_src>

<mosaic_0001>
module attributes {stable_mosaic.version = 11 : i64} {
  func.func @_select_attention_kernel(%arg0: i32, %arg1: memref<2x160xf32, #tpu.memory_space<vmem>>, %arg2: memref<2x160xf32, #tpu.memory_space<vmem>>, %arg3: memref<160x80xf32, #tpu.memory_space<vmem>>, %arg4: memref<160x80xf32, #tpu.memory_space<vmem>>, %arg5: memref<1x80xf32, #tpu.memory_space<vmem>>, %arg6: memref<1x80xf32, #tpu.memory_space<vmem>>, %arg7: memref<2x25xf32, #tpu.memory_space<vmem>>) attributes {dimension_semantics = [#tpu.dimension_semantics<parallel>], iteration_bounds = array<i64: 1>, scalar_prefetch = 0 : i64, scratch_operands = 0 : i64, tpu.core_type = #tpu.core_type<tc>, window_params = [{transform_indices = @transform_0, window_bounds = array<i64: 2, 160>}, {transform_indices = @transform_1, window_bounds = array<i64: 2, 160>}, {pipeline_mode = #tpu.pipeline_mode<synchronous>, transform_indices = @transform_2, window_bounds = array<i64: 160, 80>}, {pipeline_mode = #tpu.pipeline_mode<synchronous>, transform_indices = @transform_3, window_bounds = array<i64: 160, 80>}, {pipeline_mode = #tpu.pipeline_mode<synchronous>, transform_indices = @transform_4, window_bounds = array<i64: 1, 80>}, {pipeline_mode = #tpu.pipeline_mode<synchronous>, transform_indices = @transform_5, window_bounds = array<i64: 1, 80>}, {transform_indices = @transform_6, window_bounds = array<i64: 2, 25>}]} {
    %c0 = arith.constant 0 : index
    %c0_0 = arith.constant 0 : index
    %0 = vector.load %arg1[%c0, %c0_0] : memref<2x160xf32, #tpu.memory_space<vmem>>, vector<2x160xf32>
    %c0_1 = arith.constant 0 : index
    %c0_2 = arith.constant 0 : index
    %1 = vector.load %arg3[%c0_1, %c0_2] : memref<160x80xf32, #tpu.memory_space<vmem>>, vector<160x80xf32>
    %cst = arith.constant dense<0.000000e+00> : vector<2x80xf32>
    %2 = tpu.matmul %0, %1, %cst {dimension_numbers = #tpu.dot_dimension_numbers<[1], [0], [0], [1], [0, 0, 1, 1], [], []>} : vector<2x160xf32>, vector<160x80xf32>, vector<2x80xf32> -> vector<2x80xf32>
    %c0_3 = arith.constant 0 : index
    %c0_4 = arith.constant 0 : index
    %3 = vector.load %arg5[%c0_3, %c0_4] : memref<1x80xf32, #tpu.memory_space<vmem>>, vector<1x80xf32>
    %4 = vector.broadcast %3 : vector<1x80xf32> to vector<2x80xf32>
    %5 = arith.addf %2, %4 : vector<2x80xf32>
    %c0_5 = arith.constant 0 : index
    %c0_6 = arith.constant 0 : index
    %6 = vector.load %arg2[%c0_5, %c0_6] : memref<2x160xf32, #tpu.memory_space<vmem>>, vector<2x160xf32>
    %c0_7 = arith.constant 0 : index
    %c0_8 = arith.constant 0 : index
    %7 = vector.load %arg4[%c0_7, %c0_8] : memref<160x80xf32, #tpu.memory_space<vmem>>, vector<160x80xf32>
    %cst_9 = arith.constant dense<0.000000e+00> : vector<2x80xf32>
    %8 = tpu.matmul %6, %7, %cst_9 {dimension_numbers = #tpu.dot_dimension_numbers<[1], [0], [0], [1], [0, 0, 1, 1], [], []>} : vector<2x160xf32>, vector<160x80xf32>, vector<2x80xf32> -> vector<2x80xf32>
    %c0_10 = arith.constant 0 : index
    %c0_11 = arith.constant 0 : index
    %9 = vector.load %arg6[%c0_10, %c0_11] : memref<1x80xf32, #tpu.memory_space<vmem>>, vector<1x80xf32>
    %10 = vector.broadcast %9 : vector<1x80xf32> to vector<2x80xf32>
    %11 = arith.addf %8, %10 : vector<2x80xf32>
    %12 = vector.extract_strided_slice %11 {offsets = [0, 0], sizes = [2, 16], strides = [1, 1]} : vector<2x80xf32> to vector<2x16xf32>
    %13 = vector.extract_strided_slice %11 {offsets = [0, 16], sizes = [2, 16], strides = [1, 1]} : vector<2x80xf32> to vector<2x16xf32>
    %14 = vector.extract_strided_slice %11 {offsets = [0, 32], sizes = [2, 16], strides = [1, 1]} : vector<2x80xf32> to vector<2x16xf32>
    %15 = vector.extract_strided_slice %11 {offsets = [0, 48], sizes = [2, 16], strides = [1, 1]} : vector<2x80xf32> to vector<2x16xf32>
    %16 = vector.extract_strided_slice %11 {offsets = [0, 64], sizes = [2, 16], strides = [1, 1]} : vector<2x80xf32> to vector<2x16xf32>
    %17 = vector.extract_strided_slice %5 {offsets = [0, 0], sizes = [2, 16], strides = [1, 1]} : vector<2x80xf32> to vector<2x16xf32>
    %18 = arith.mulf %17, %12 : vector<2x16xf32>
    %cst_12 = arith.constant dense<0.000000e+00> : vector<2xf32>
    %19 = vector.multi_reduction <add>, %18, %cst_12 [1] : vector<2x16xf32> to vector<2xf32>
    %20 = vector.shape_cast %19 : vector<2xf32> to vector<2x1xf32>
    %21 = arith.mulf %17, %13 : vector<2x16xf32>
    %cst_13 = arith.constant dense<0.000000e+00> : vector<2xf32>
    %22 = vector.multi_reduction <add>, %21, %cst_13 [1] : vector<2x16xf32> to vector<2xf32>
    %23 = vector.shape_cast %22 : vector<2xf32> to vector<2x1xf32>
    %24 = arith.mulf %17, %14 : vector<2x16xf32>
    %cst_14 = arith.constant dense<0.000000e+00> : vector<2xf32>
    %25 = vector.multi_reduction <add>, %24, %cst_14 [1] : vector<2x16xf32> to vector<2xf32>
    %26 = vector.shape_cast %25 : vector<2xf32> to vector<2x1xf32>
    %27 = arith.mulf %17, %15 : vector<2x16xf32>
    %cst_15 = arith.constant dense<0.000000e+00> : vector<2xf32>
    %28 = vector.multi_reduction <add>, %27, %cst_15 [1] : vector<2x16xf32> to vector<2xf32>
    %29 = vector.shape_cast %28 : vector<2xf32> to vector<2x1xf32>
    %30 = arith.mulf %17, %16 : vector<2x16xf32>
    %cst_16 = arith.constant dense<0.000000e+00> : vector<2xf32>
    %31 = vector.multi_reduction <add>, %30, %cst_16 [1] : vector<2x16xf32> to vector<2xf32>
    %32 = vector.shape_cast %31 : vector<2xf32> to vector<2x1xf32>
    %33 = tpu.concatenate %20, %23, %26, %29, %32 in 1 : vector<2x1xf32>, vector<2x1xf32>, vector<2x1xf32>, vector<2x1xf32>, vector<2x1xf32> -> vector<2x5xf32>
    %34 = vector.extract_strided_slice %5 {offsets = [0, 16], sizes = [2, 16], strides = [1, 1]} : vector<2x80xf32> to vector<2x16xf32>
    %35 = arith.mulf %34, %12 : vector<2x16xf32>
    %cst_17 = arith.constant dense<0.000000e+00> : vector<2xf32>
    %36 = vector.multi_reduction <add>, %35, %cst_17 [1] : vector<2x16xf32> to vector<2xf32>
    %37 = vector.shape_cast %36 : vector<2xf32> to vector<2x1xf32>
    %38 = arith.mulf %34, %13 : vector<2x16xf32>
    %cst_18 = arith.constant dense<0.000000e+00> : vector<2xf32>
    %39 = vector.multi_reduction <add>, %38, %cst_18 [1] : vector<2x16xf32> to vector<2xf32>
    %40 = vector.shape_cast %39 : vector<2xf32> to vector<2x1xf32>
    %41 = arith.mulf %34, %14 : vector<2x16xf32>
    %cst_19 = arith.constant dense<0.000000e+00> : vector<2xf32>
    %42 = vector.multi_reduction <add>, %41, %cst_19 [1] : vector<2x16xf32> to vector<2xf32>
    %43 = vector.shape_cast %42 : vector<2xf32> to vector<2x1xf32>
    %44 = arith.mulf %34, %15 : vector<2x16xf32>
    %cst_20 = arith.constant dense<0.000000e+00> : vector<2xf32>
    %45 = vector.multi_reduction <add>, %44, %cst_20 [1] : vector<2x16xf32> to vector<2xf32>
    %46 = vector.shape_cast %45 : vector<2xf32> to vector<2x1xf32>
    %47 = arith.mulf %34, %16 : vector<2x16xf32>
    %cst_21 = arith.constant dense<0.000000e+00> : vector<2xf32>
    %48 = vector.multi_reduction <add>, %47, %cst_21 [1] : vector<2x16xf32> to vector<2xf32>
    %49 = vector.shape_cast %48 : vector<2xf32> to vector<2x1xf32>
    %50 = tpu.concatenate %37, %40, %43, %46, %49 in 1 : vector<2x1xf32>, vector<2x1xf32>, vector<2x1xf32>, vector<2x1xf32>, vector<2x1xf32> -> vector<2x5xf32>
    %51 = vector.extract_strided_slice %5 {offsets = [0, 32], sizes = [2, 16], strides = [1, 1]} : vector<2x80xf32> to vector<2x16xf32>
    %52 = arith.mulf %51, %12 : vector<2x16xf32>
    %cst_22 = arith.constant dense<0.000000e+00> : vector<2xf32>
    %53 = vector.multi_reduction <add>, %52, %cst_22 [1] : vector<2x16xf32> to vector<2xf32>
    %54 = vector.shape_cast %53 : vector<2xf32> to vector<2x1xf32>
    %55 = arith.mulf %51, %13 : vector<2x16xf32>
    %cst_23 = arith.constant dense<0.000000e+00> : vector<2xf32>
    %56 = vector.multi_reduction <add>, %55, %cst_23 [1] : vector<2x16xf32> to vector<2xf32>
    %57 = vector.shape_cast %56 : vector<2xf32> to vector<2x1xf32>
    %58 = arith.mulf %51, %14 : vector<2x16xf32>
    %cst_24 = arith.constant dense<0.000000e+00> : vector<2xf32>
    %59 = vector.multi_reduction <add>, %58, %cst_24 [1] : vector<2x16xf32> to vector<2xf32>
    %60 = vector.shape_cast %59 : vector<2xf32> to vector<2x1xf32>
    %61 = arith.mulf %51, %15 : vector<2x16xf32>
    %cst_25 = arith.constant dense<0.000000e+00> : vector<2xf32>
    %62 = vector.multi_reduction <add>, %61, %cst_25 [1] : vector<2x16xf32> to vector<2xf32>
    %63 = vector.shape_cast %62 : vector<2xf32> to vector<2x1xf32>
    %64 = arith.mulf %51, %16 : vector<2x16xf32>
    %cst_26 = arith.constant dense<0.000000e+00> : vector<2xf32>
    %65 = vector.multi_reduction <add>, %64, %cst_26 [1] : vector<2x16xf32> to vector<2xf32>
    %66 = vector.shape_cast %65 : vector<2xf32> to vector<2x1xf32>
    %67 = tpu.concatenate %54, %57, %60, %63, %66 in 1 : vector<2x1xf32>, vector<2x1xf32>, vector<2x1xf32>, vector<2x1xf32>, vector<2x1xf32> -> vector<2x5xf32>
    %68 = vector.extract_strided_slice %5 {offsets = [0, 48], sizes = [2, 16], strides = [1, 1]} : vector<2x80xf32> to vector<2x16xf32>
    %69 = arith.mulf %68, %12 : vector<2x16xf32>
    %cst_27 = arith.constant dense<0.000000e+00> : vector<2xf32>
    %70 = vector.multi_reduction <add>, %69, %cst_27 [1] : vector<2x16xf32> to vector<2xf32>
    %71 = vector.shape_cast %70 : vector<2xf32> to vector<2x1xf32>
    %72 = arith.mulf %68, %13 : vector<2x16xf32>
    %cst_28 = arith.constant dense<0.000000e+00> : vector<2xf32>
    %73 = vector.multi_reduction <add>, %72, %cst_28 [1] : vector<2x16xf32> to vector<2xf32>
    %74 = vector.shape_cast %73 : vector<2xf32> to vector<2x1xf32>
    %75 = arith.mulf %68, %14 : vector<2x16xf32>
    %cst_29 = arith.constant dense<0.000000e+00> : vector<2xf32>
    %76 = vector.multi_reduction <add>, %75, %cst_29 [1] : vector<2x16xf32> to vector<2xf32>
    %77 = vector.shape_cast %76 : vector<2xf32> to vector<2x1xf32>
    %78 = arith.mulf %68, %15 : vector<2x16xf32>
    %cst_30 = arith.constant dense<0.000000e+00> : vector<2xf32>
    %79 = vector.multi_reduction <add>, %78, %cst_30 [1] : vector<2x16xf32> to vector<2xf32>
    %80 = vector.shape_cast %79 : vector<2xf32> to vector<2x1xf32>
    %81 = arith.mulf %68, %16 : vector<2x16xf32>
    %cst_31 = arith.constant dense<0.000000e+00> : vector<2xf32>
    %82 = vector.multi_reduction <add>, %81, %cst_31 [1] : vector<2x16xf32> to vector<2xf32>
    %83 = vector.shape_cast %82 : vector<2xf32> to vector<2x1xf32>
    %84 = tpu.concatenate %71, %74, %77, %80, %83 in 1 : vector<2x1xf32>, vector<2x1xf32>, vector<2x1xf32>, vector<2x1xf32>, vector<2x1xf32> -> vector<2x5xf32>
    %85 = vector.extract_strided_slice %5 {offsets = [0, 64], sizes = [2, 16], strides = [1, 1]} : vector<2x80xf32> to vector<2x16xf32>
    %86 = arith.mulf %85, %12 : vector<2x16xf32>
    %cst_32 = arith.constant dense<0.000000e+00> : vector<2xf32>
    %87 = vector.multi_reduction <add>, %86, %cst_32 [1] : vector<2x16xf32> to vector<2xf32>
    %88 = vector.shape_cast %87 : vector<2xf32> to vector<2x1xf32>
    %89 = arith.mulf %85, %13 : vector<2x16xf32>
    %cst_33 = arith.constant dense<0.000000e+00> : vector<2xf32>
    %90 = vector.multi_reduction <add>, %89, %cst_33 [1] : vector<2x16xf32> to vector<2xf32>
    %91 = vector.shape_cast %90 : vector<2xf32> to vector<2x1xf32>
    %92 = arith.mulf %85, %14 : vector<2x16xf32>
    %cst_34 = arith.constant dense<0.000000e+00> : vector<2xf32>
    %93 = vector.multi_reduction <add>, %92, %cst_34 [1] : vector<2x16xf32> to vector<2xf32>
    %94 = vector.shape_cast %93 : vector<2xf32> to vector<2x1xf32>
    %95 = arith.mulf %85, %15 : vector<2x16xf32>
    %cst_35 = arith.constant dense<0.000000e+00> : vector<2xf32>
    %96 = vector.multi_reduction <add>, %95, %cst_35 [1] : vector<2x16xf32> to vector<2xf32>
    %97 = vector.shape_cast %96 : vector<2xf32> to vector<2x1xf32>
    %98 = arith.mulf %85, %16 : vector<2x16xf32>
    %cst_36 = arith.constant dense<0.000000e+00> : vector<2xf32>
    %99 = vector.multi_reduction <add>, %98, %cst_36 [1] : vector<2x16xf32> to vector<2xf32>
    %100 = vector.shape_cast %99 : vector<2xf32> to vector<2x1xf32>
    %101 = tpu.concatenate %88, %91, %94, %97, %100 in 1 : vector<2x1xf32>, vector<2x1xf32>, vector<2x1xf32>, vector<2x1xf32>, vector<2x1xf32> -> vector<2x5xf32>
    %102 = tpu.concatenate %33, %50, %67, %84, %101 in 1 : vector<2x5xf32>, vector<2x5xf32>, vector<2x5xf32>, vector<2x5xf32>, vector<2x5xf32> -> vector<2x25xf32>
    %cst_37 = arith.constant 2.500000e-01 : f32
    %103 = vector.broadcast %cst_37 : f32 to vector<2x25xf32>
    %104 = arith.mulf %102, %103 : vector<2x25xf32>
    %c0_38 = arith.constant 0 : index
    %c0_39 = arith.constant 0 : index
    %105 = vector.load %arg7[%c0_38, %c0_39] : memref<2x25xf32, #tpu.memory_space<vmem>>, vector<2x25xf32>
    tpu.vector_store %arg7[%c0_38, %c0_39], %104 {strides = array<i32>} : memref<2x25xf32, #tpu.memory_space<vmem>>, vector<2x25xf32>,
    return
  }
  func.func @transform_0(%arg0: i32) -> (i32, i32) {
    %c0_i32 = arith.constant 0 : i32
    %c0_i32_0 = arith.constant 0 : i32
    return %arg0, %c0_i32 : i32, i32
  }
  func.func @transform_1(%arg0: i32) -> (i32, i32) {
    %c0_i32 = arith.constant 0 : i32
    %c0_i32_0 = arith.constant 0 : i32
    return %arg0, %c0_i32 : i32, i32
  }
  func.func @transform_2(%arg0: i32) -> (i32, i32) {
    %c0_i32 = arith.constant 0 : i32
    %c0_i32_0 = arith.constant 0 : i32
    %c0_i32_1 = arith.constant 0 : i32
    return %c0_i32, %c0_i32_0 : i32, i32
  }
  func.func @transform_3(%arg0: i32) -> (i32, i32) {
    %c0_i32 = arith.constant 0 : i32
    %c0_i32_0 = arith.constant 0 : i32
    %c0_i32_1 = arith.constant 0 : i32
    return %c0_i32, %c0_i32_0 : i32, i32
  }
  func.func @transform_4(%arg0: i32) -> (i32, i32) {
    %c0_i32 = arith.constant 0 : i32
    %c0_i32_0 = arith.constant 0 : i32
    %c0_i32_1 = arith.constant 0 : i32
    return %c0_i32, %c0_i32_0 : i32, i32
  }
  func.func @transform_5(%arg0: i32) -> (i32, i32) {
    %c0_i32 = arith.constant 0 : i32
    %c0_i32_0 = arith.constant 0 : i32
    %c0_i32_1 = arith.constant 0 : i32
    return %c0_i32, %c0_i32_0 : i32, i32
  }
  func.func @transform_6(%arg0: i32) -> (i32, i32) {
    %c0_i32 = arith.constant 0 : i32
    %c0_i32_0 = arith.constant 0 : i32
    return %arg0, %c0_i32 : i32, i32
  }
}

</mosaic_0001>

<bundles_post_ra>
// kernel: tpu_custom_call.1
= control target key start
LH: loop header
LB: loop body
LE: loop exit
PB: predicated region body
PF: predicated region fallthrough
CT: control target
= control target key end

     0   :  { %11 = vsyncpa [#allocation3], 0  ;;  %s767_s0 = inlined_call_operand.hbm [shape: f32[2,160], index: 0, kind: input, shape index: {}]   ;;  %s768_s1 = inlined_call_operand.hbm [shape: f32[2,160], index: 1, kind: input, shape index: {}]   ;;  %s769_s2 = inlined_call_operand.hbm [shape: f32[160,80], index: 2, kind: input, shape index: {}]   ;;  %s770_s3 = inlined_call_operand.hbm [shape: f32[160,80], index: 3, kind: input, shape index: {}]   ;;  %s771_s4 = inlined_call_operand.vmem [shape: f32[1,80], index: 4, kind: input, shape index: {}]   ;;  %s772_s5 = inlined_call_operand.vmem [shape: f32[1,80], index: 5, kind: input, shape index: {}]   ;;  %s773_s6 = inlined_call_operand.hbm [shape: f32[2,25], index: 6, kind: output, shape index: {}]  }
   0x1   :  { %12 = vsyncpa [#allocation6], 0 }
   0x2   :  { %13 = vsyncpa [#allocation9], 0  ;;  %s31_s23 = sshll.u32 %s768_s1, 4  ;;  %s32_s23 = int_to_ptr.hbm [resolvable:$true] %s31_s23 }
   0x3   :  { %14 = vsyncpa [#allocation4], 0  ;;  %s622_s24 = smov [#allocation5]   ;;  %s20_s28 = sshll.u32 %s767_s0, 4  ;;  %s21_s28 = int_to_ptr.hbm [resolvable:$true] %s20_s28 }
   0x4   :  { %s33_s25 = sshll.u32 %s622_s24, 4  ;;  %s623_s29 = smov [#allocation2]   ;;  %s34_s25 = int_to_ptr.vmem [resolvable:$true] %s33_s25 }
   0x5   :  { %36 = dma.hbm_to_vmem [thread:$0]  %s32_s23, 64, %s34_s25, [#allocation6]  }
   0x6   :  { %s22_s30 = sshll.u32 %s623_s29, 4  ;;  %s41_s9 = sshll.u32 %s769_s2, 4  ;;  %s23_s30 = int_to_ptr.vmem [resolvable:$true] %s22_s30  ;;  %s42_s9 = int_to_ptr.hbm [resolvable:$true] %s41_s9 }
   0x7   :  { %25 = dma.hbm_to_vmem [thread:$0]  %s21_s28, 64, %s23_s30, [#allocation3]  }
   0x8   :  { %s624_s1 = smov [#allocation7]   ;;  %s54_s13 = sshll.u32 %s770_s3, 4  ;;  %s55_s13 = int_to_ptr.hbm [resolvable:$true] %s54_s13 }
   0x9   :  { %s43_s10 = sshll.u32 %s624_s1, 4  ;;  %s625_s14 = smov 128   ;;  %s44_s10 = int_to_ptr.vmem [resolvable:$true] %s43_s10 }
   0xa   :  { %s626_s0 = smov 8   ;;  %s627_s15 = smov [#allocation8]  }
   0xb   :  { %49 = dma.hbm_to_vmem [thread:$0]  %s42_s9, 2560, %s44_s10, [#allocation6], %s625_s14, %s625_s14, %s626_s0  }
   0xc   :  { %s56_s16 = sshll.u32 %s627_s15, 4  ;;  %s57_s16 = int_to_ptr.vmem [resolvable:$true] %s56_s16 }
   0xd   :  { %62 = dma.hbm_to_vmem [thread:$0]  %s55_s13, 2560, %s57_s16, [#allocation9], %s625_s14, %s625_s14, %s626_s0  }
   0xe   :  { %614 = dma.done.wait [#allocation3], 64  }
   0xf   :  { %615 = vsyncadd [#allocation3], 4294967232 }
  0x10   :  { %616 = dma.done.wait [#allocation6], 2624  }
  0x11   :  { %617 = vsyncadd [#allocation6], 4294964672 }
  0x12   :  { %618 = dma.done.wait [#allocation9], 2560  }
  0x13   :  { %619 = vsyncadd [#allocation9], 4294964736  ;;  %v172_v0 = vld [vmem:[#allocation8 + $0x78] sm:$0xff]  ;;  %v171_v1 = vld [vmem:[#allocation8 + $0x70] sm:$0xff]  ;;  %vm113_vm0 = vcmask 261120   ;;  %s628_s17 = smov 80  }
  0x14   :  { %188 = vmatpush.msra.mxu2 %v172_v0  ;;  %v99_v2 = vld [vmem:[#allocation7 + $0x78] sm:$0xff]  ;;  %v98_v3 = vld [vmem:[#allocation7 + $0x70] sm:$0xff]  ;;  %v170_v4 = vld [vmem:[#allocation8 + $0x68] sm:$0xff]  ;;  %s629_s18 = smov 96   ;;  %s630_s19 = smov 112   ;;  %vm229_vm1 = vcmask 123904  }
  0x15   :  { %116 = vmatpush.msra.mxu0 %v99_v2  ;;  %v97_v5 = vld [vmem:[#allocation7 + $0x68] sm:$0xff]  ;;  %v169_v6 = vld [vmem:[#allocation8 + $0x60] sm:$0xff]  ;;  %v168_v8 = vld [vmem:[#allocation8 + $0x58] sm:$0xff]  ;;  %s631_s20 = smov 64   ;;  %s632_s21 = smov 32   ;;  %vm262_vm2 = vcmask 7168  }
  0x16   :  { %189 = vmatpush.msra.mxu2 %v171_v1  ;;  %v96_v7 = vld [vmem:[#allocation7 + $0x60] sm:$0xff]  ;;  %v95_v9 = vld [vmem:[#allocation7 + $0x58] sm:$0xff]  ;;  %v167_v10 = vld [vmem:[#allocation8 + $0x50] sm:$0xff]  ;;  %s633_s23 = smov 16   ;;  %s634_s24 = smov 48   ;;  %vm264_vm3 = vcmask 15360  }
  0x17   :  { %117 = vmatpush.msra.mxu0 %v98_v3  ;;  %v176_v11 = vld [vmem:[#allocation8 + $0x98] sm:$0xff]  ;;  %v94_v12 = vld [vmem:[#allocation7 + $0x50] sm:$0xff]  ;;  %v166_v14 = vld [vmem:[#allocation8 + $0x48] sm:$0xff]  ;;  %vm266_vm4 = vcmask 23552   ;;  %vm268_vm5 = vcmask 31744   ;;  %s636_s25 = smov 10  }
  0x18   :  { %190 = vmatpush.msra.mxu2 %v170_v4  ;;  %220 = vmatpush.msra.mxu3 %v176_v11  ;;  %v175_v13 = vld [vmem:[#allocation8 + $0x90] sm:$0xff]  ;;  %v174_v15 = vld [vmem:[#allocation8 + $0x88] sm:$0xff]  ;;  %v83_v16 = vld [vmem:[#allocation2] sm:$0xf]  ;;  %s637_s26 = smov 15   ;;  %s638_s27 = smov 20  }
  0x19   :  { %118 = vmatpush.msra.mxu0 %v97_v5  ;;  %v93_v17 = vld [vmem:[#allocation7 + $0x48] sm:$0xff]  ;;  %109 = vst [vmem:[#allocation1] ss:$4 sm:$0xff] %v83_v16  ;;  %v103_v18 = vld [vmem:[#allocation7 + $0x98] sm:$0xff]  ;;  %v165_v19 = vld [vmem:[#allocation8 + $0x40] sm:$0xff]  ;;  %vm442_vm6 = vcmask 39936  }
  0x1a   :  { %191 = vmatpush.msra.mxu2 %v169_v6  ;;  %221 = vmatpush.msra.mxu3 %v175_v13  ;;  %v173_v20 = vld [vmem:[#allocation8 + $0x80] sm:$0xff]  ;;  %v102_v21 = vld [vmem:[#allocation7 + $0x90] sm:$0xff]  ;;  %v101_v23 = vld [vmem:[#allocation7 + $0x88] sm:$0xff]  ;;  %vm444_vm7 = vcmask 80896   ;;  %vm446_vm8 = vcmask 121856   ;;  %vm448_vm9 = vcmask 162816  }
  0x1b   :  { %119 = vmatpush.msra.mxu0 %v96_v7  ;;  %148 = vmatpush.msra.mxu1 %v103_v18  ;;  %v92_v22 = vld [vmem:[#allocation7 + $0x40] sm:$0xff]  ;;  %v164_v24 = vld [vmem:[#allocation8 + $0x38] sm:$0xff]  ;;  %v163_v27 = vld [vmem:[#allocation8 + $0x30] sm:$0xff]  ;;  %s639_s28 = smov [#allocation10]   ;;  %s460_s8 = sshll.u32 %s773_s6, 4  ;;  %vm451_vm10 = vcmask 197632   ;;  %s461_s8 = int_to_ptr.hbm [resolvable:$true] %s460_s8 }
  0x1c   :  { %192 = vmatpush.msra.mxu2 %v168_v8  ;;  %222 = vmatpush.msra.mxu3 %v174_v15  ;;  %v91_v25 = vld [vmem:[#allocation7 + $0x38] sm:$0xff]  ;;  %v100_v26 = vld [vmem:[#allocation7 + $0x80] sm:$0xff]  ;;  %v162_v29 = vld [vmem:[#allocation8 + $0x28] sm:$0xff]  ;;  %s458_s29 = sshll.u32 %s639_s28, 4  ;;  %s459_s29 = int_to_ptr.vmem [resolvable:$true] %s458_s29 }
  0x1d   :  { %120 = vmatpush.msra.mxu0 %v95_v9  ;;  %149 = vmatpush.msra.mxu1 %v102_v21  ;;  %v156_v28 = vld [vmem:[#allocation5] sm:$0xf]  ;;  %v90_v30 = vld [vmem:[#allocation7 + $0x30] sm:$0xff]  ;;  %v89_v33 = vld [vmem:[#allocation7 + $0x28] sm:$0xff] }
  0x1e   :  { %193 = vmatpush.msra.mxu2 %v167_v10  ;;  %223 = vmatpush.msra.mxu3 %v173_v20  ;;  %v161_v34 = vld [vmem:[#allocation8 + $0x20] sm:$0xff]  ;;  %v160_v36 = vld [vmem:[#allocation8 + $0x18] sm:$0xff]  ;;  %v159_v38 = vld [vmem:[#allocation8 + $0x10] sm:$0xff] }
  0x1f   :  { %121 = vmatpush.msra.mxu0 %v94_v12  ;;  %150 = vmatpush.msra.mxu1 %v101_v23  ;;  %v88_v35 = vld [vmem:[#allocation7 + $0x20] sm:$0xff]  ;;  %v87_v37 = vld [vmem:[#allocation7 + $0x18] sm:$0xff]  ;;  %v86_v39 = vld [vmem:[#allocation7 + $0x10] sm:$0xff] }
  0x20   :  { %194 = vmatpush.msra.mxu2 %v166_v14  ;;  %v110_v31 = vld.sshfl [vmem:[#allocation1] sm:$0xff pattern:$0x73625140]  ;;  %v111_v32 = vld.sshfl [vmem:[#allocation1 + $0x8] sm:$0xff pattern:$0x73625140] }
  0x21   :  { %122 = vmatpush.msra.mxu0 %v93_v17  ;;  %151 = vmatpush.msra.mxu1 %v100_v26  ;;  %182 = vst [vmem:[#allocation1] ss:$4 sm:$0xff] %v156_v28  ;;  %v158_v40 = vld [vmem:[#allocation8 + $0x8] sm:$0xff]  ;;  %v157_v43 = vld [vmem:[#allocation8] sm:$0xff]  ;;  %v493_v46 = vld [vmem:[%s772_s5] ss:$0 sm:$0xff] }
  0x22   :  { %195 = vmatpush.msra.mxu2 %v165_v19  ;;  %472 = vmatmul.msk.f32.vlgmr.msra.gmra.mxu1 %vm113_vm0, %v111_v32  ;;  %v85_v42 = vld [vmem:[#allocation7 + $0x8] sm:$0xff]  ;;  %v84_v45 = vld [vmem:[#allocation7] sm:$0xff]  ;;  %v492_v51 = vld [vmem:[%s771_s4] ss:$0 sm:$0xff]  ;;  %s635_s4 = smov 5  }
  0x23   :  { %123 = vmatpush.msra.mxu0 %v92_v22 }
  0x24   :  { %196 = vmatpush.msra.mxu2 %v164_v24 }
  0x25   :  { %124 = vmatpush.msra.mxu0 %v91_v25 }
  0x26   :  { %197 = vmatpush.msra.mxu2 %v163_v27 }
  0x27   :  { %125 = vmatpush.msra.mxu0 %v90_v30 }
  0x28   :  { %198 = vmatpush.msra.mxu2 %v162_v29  ;;  %v184_v41 = vld.sshfl [vmem:[#allocation1 + $0x8] sm:$0xff pattern:$0x73625140]  ;;  %v183_v44 = vld.sshfl [vmem:[#allocation1] sm:$0xff pattern:$0x73625140] }
  0x29   :  { %126 = vmatpush.msra.mxu0 %v89_v33  ;;  %473 = vmatmul.msk.f32.vlgmr.msra.gmra.mxu3 %vm113_vm0, %v184_v41 }
  0x2a   :  { %199 = vmatpush.msra.mxu2 %v161_v34 }
  0x2b   :  { %127 = vmatpush.msra.mxu0 %v88_v35 }
  0x2c   :  { %200 = vmatpush.msra.mxu2 %v160_v36 }
  0x2d   :  { %128 = vmatpush.msra.mxu0 %v87_v37 }
  0x2e   :  { %201 = vmatpush.msra.mxu2 %v159_v38 }
  0x2f   :  { %129 = vmatpush.msra.mxu0 %v86_v39 }
  0x30   :  { %202 = vmatpush.msra.mxu2 %v158_v40 }
  0x31   :  { %130 = vmatpush.msra.mxu0 %v85_v42 }
  0x32   :  { %203 = vmatpush.msra.mxu2 %v157_v43 }
  0x33   :  { %204 = vmatmul.f32.vlgmr.msra.gmra.mxu2 %v183_v44  ;;  %131 = vmatpush.msra.mxu0 %v84_v45 }
  0x34   :  { %132 = vmatmul.f32.vlgmr.msra.gmra.mxu0 %v110_v31 }
  0x9f   :  { %v153_v54 = vpop.f32.mrf.mxu1 }
  0xac   :  { %v225_v48 = vpop.f32.mrf.mxu3 }
  0xb1   :  { %v133_v52 = vpop.f32.mrf.mxu0 }
  0xb2   :  { %v134_v53 = vadd.f32 %v492_v51, %v133_v52 }
  0xb4   :  { %v154_v55 = vadd.f32 %v153_v54, %v134_v53 }
  0xb6   :  { %v205_v47 = vpop.f32.mrf.mxu2 }
  0xb7   :  { %v206_v49 = vadd.f32 %v493_v46, %v205_v47 }
  0xb9   :  { %v226_v50 = vadd.f32 %v225_v48, %v206_v49 }
  0xbb   :  { %248 = vrot.lane.b32.xlu2 %v226_v50, %s628_s17  ;;  %241 = vrot.lane.b32.xlu1 %v226_v50, %s629_s18  ;;  %v228_v56 = vmul.f32 %v226_v50, %v154_v55 }
  0xbc   :  { %234 = vrot.lane.b32.xlu0 %v226_v50, %s630_s19 }
  0xbd   :  { %v230_v58 = vsel %vm229_vm1, %v228_v56, 0.0 }
  0xc3   :  { %255 = vrot.lane.b32.xlu2 %v226_v50, %s631_s20 }
  0xc4   :  { %313 = vrot.lane.b32.xlu0 %v226_v50, %s632_s21 }
  0xcb   :  { %270 = vrot.lane.b32.xlu2 %v226_v50, %s633_s23 }
  0xcc   :  { %352 = vrot.lane.b32.xlu0 %v226_v50, %s634_s24 }
  0xd4   :  { %282 = vrot.lane.b32.xlu0 %v228_v56, %s630_s19 }
  0xdc   :  { %330 = vrot.lane.b32.xlu0 %v228_v56, %s629_s18 }
  0xe4   :  { %375 = vrot.lane.b32.xlu0 %v228_v56, %s628_s17 }
  0xec   :  { %416 = vrot.lane.b32.xlu0 %v228_v56, %s631_s20 }
 0x115   :  { %v249_v57 = vpop.permute.xlu2 %248 }
 0x116   :  { %231 = vadd.xlane.f32.xlu0 %v230_v58  ;;  %v251_v2 = vmul.f32 %v249_v57, %v154_v55 }
 0x118   :  { %v252_v9 = vsel %vm229_vm1, %v251_v2, 0.0 }
 0x11d   :  { %v256_v59 = vpop.permute.xlu2 %255 }
 0x11e   :  { %v258_v7 = vmul.f32 %v256_v59, %v154_v55 }
 0x120   :  { %v259_v11 = vsel %vm229_vm1, %v258_v7, 0.0 }
 0x125   :  { %v271_v60 = vpop.permute.xlu2 %270 }
 0x126   :  { %v273_v61 = vmul.f32 %v271_v60, %v154_v55 }
 0x128   :  { %275 = vrot.lane.b32.xlu2 %v273_v61, %s630_s19 }
 0x12d   :  { %v242_v62 = vpop.permute.xlu1 %241 }
 0x12e   :  { %v244_v63 = vmul.f32 %v242_v62, %v154_v55  ;;  %v235_v0 = vpop.permute.xlu0 %234 }
 0x12f   :  { %v237_v1 = vmul.f32 %v235_v0, %v154_v55 }
 0x130   :  { %296 = vrot.lane.b32.xlu2 %v244_v63, %s630_s19  ;;  %v245_v16 = vsel %vm229_vm1, %v244_v63, 0.0 }
 0x131   :  { %289 = vrot.lane.b32.xlu1 %v237_v1, %s630_s19  ;;  %336 = vrot.lane.b32.xlu0 %v237_v1, %s629_s18  ;;  %v238_v8 = vsel %vm229_vm1, %v237_v1, 0.0 }
 0x136   :  { %v314_v3 = vpop.permute.xlu0 %313 }
 0x137   :  { %v316_v4 = vmul.f32 %v314_v3, %v154_v55 }
 0x138   :  { %303 = vrot.lane.b32.xlu2 %v251_v2, %s630_s19 }
 0x139   :  { %318 = vrot.lane.b32.xlu1 %v316_v4, %s629_s18  ;;  %342 = vrot.lane.b32.xlu0 %v244_v63, %s629_s18 }
 0x13e   :  { %v353_v5 = vpop.permute.xlu0 %352 }
 0x13f   :  { %v355_v6 = vmul.f32 %v353_v5, %v154_v55 }
 0x140   :  { %324 = vrot.lane.b32.xlu2 %v273_v61, %s629_s18 }
 0x141   :  { %357 = vrot.lane.b32.xlu1 %v355_v6, %s628_s17  ;;  %363 = vrot.lane.b32.xlu0 %v316_v4, %s628_s17 }
 0x146   :  { %v283_v10 = vpop.permute.xlu0 %282 }
 0x147   :  { %v285_v14 = vsel %vm229_vm1, %v283_v10, 0.0 }
 0x148   :  { %381 = vrot.lane.b32.xlu2 %v237_v1, %s628_s17 }
 0x149   :  { %410 = vrot.lane.b32.xlu1 %v273_v61, %s631_s20  ;;  %369 = vrot.lane.b32.xlu0 %v273_v61, %s628_s17 }
 0x14e   :  { %v331_v12 = vpop.permute.xlu0 %330 }
 0x14f   :  { %v333_v19 = vsel %vm229_vm1, %v331_v12, 0.0 }
 0x150   :  { %392 = vrot.lane.b32.xlu2 %v258_v7, %s631_s20 }
 0x156   :  { %v376_v15 = vpop.permute.xlu0 %375 }
 0x157   :  { %v378_v18 = vsel %vm229_vm1, %v376_v15, 0.0 }
 0x158   :  { %398 = vrot.lane.b32.xlu2 %v355_v6, %s631_s20 }
 0x15e   :  { %v417_v22 = vpop.permute.xlu0 %416 }
 0x15f   :  { %v419_v23 = vsel %vm229_vm1, %v417_v22, 0.0 }
 0x160   :  { %404 = vrot.lane.b32.xlu2 %v316_v4, %s631_s20 }
 0x173   :  { %239 = vadd.xlane.f32.xlu1 %v238_v8  ;;  %253 = vadd.xlane.f32.xlu0 %v252_v9 }
 0x17b   :  { %260 = vadd.xlane.f32.xlu1 %v259_v11 }
 0x182   :  { %v276_v13 = vpop.permute.xlu2 %275 }
 0x183   :  { %286 = vadd.xlane.f32.xlu1 %v285_v14  ;;  %v278_v27 = vsel %vm229_vm1, %v276_v13, 0.0 }
 0x189   :  { %246 = vadd.xlane.f32.xlu2 %v245_v16  ;;  %v232_v25 = vpop.xlane.xlu0 %231 }
 0x18a   :  { %v297_v17 = vpop.permute.xlu2 %296 }
 0x18b   :  { %379 = vadd.xlane.f32.xlu1 %v378_v18  ;;  %v299_v21 = vsel %vm229_vm1, %v297_v17, 0.0 }
 0x191   :  { %334 = vadd.xlane.f32.xlu2 %v333_v19 }
 0x192   :  { %v304_v20 = vpop.permute.xlu2 %303 }
 0x193   :  { %300 = vadd.xlane.f32.xlu1 %v299_v21  ;;  %v306_v33 = vsel %vm229_vm1, %v304_v20, 0.0 }
 0x199   :  { %420 = vadd.xlane.f32.xlu2 %v419_v23 }
 0x19a   :  { %v325_v24 = vpop.permute.xlu2 %324 }
 0x19b   :  { %v327_v26 = vsel %vm229_vm1, %v325_v24, 0.0 }
 0x19c   :  { %328 = vadd.xlane.f32.xlu1 %v327_v26 }
 0x1a1   :  { %279 = vadd.xlane.f32.xlu2 %v278_v27 }
 0x1a2   :  { %v382_v28 = vpop.permute.xlu2 %381 }
 0x1a3   :  { %v290_v29 = vpop.permute.xlu1 %289  ;;  %v337_v30 = vpop.permute.xlu0 %336  ;;  %v384_v42 = vsel %vm229_vm1, %v382_v28, 0.0 }
 0x1a4   :  { %v292_v31 = vsel %vm229_vm1, %v290_v29, 0.0  ;;  %v339_v32 = vsel %vm229_vm1, %v337_v30, 0.0 }
 0x1a5   :  { %293 = vadd.xlane.f32.xlu0 %v292_v31  ;;  %340 = vadd.xlane.f32.xlu1 %v339_v32 }
 0x1a9   :  { %307 = vadd.xlane.f32.xlu2 %v306_v33 }
 0x1aa   :  { %v393_v34 = vpop.permute.xlu2 %392 }
 0x1ab   :  { %v319_v35 = vpop.permute.xlu1 %318  ;;  %v343_v36 = vpop.permute.xlu0 %342  ;;  %v395_v50 = vsel %vm229_vm1, %v393_v34, 0.0 }
 0x1ac   :  { %v321_v37 = vsel %vm229_vm1, %v319_v35, 0.0  ;;  %v345_v38 = vsel %vm229_vm1, %v343_v36, 0.0 }
 0x1ad   :  { %322 = vadd.xlane.f32.xlu0 %v321_v37  ;;  %346 = vadd.xlane.f32.xlu1 %v345_v38 }
 0x1b2   :  { %v399_v39 = vpop.permute.xlu2 %398 }
 0x1b3   :  { %v358_v40 = vpop.permute.xlu1 %357  ;;  %v364_v43 = vpop.permute.xlu0 %363  ;;  %v401_v46 = vsel %vm229_vm1, %v399_v39, 0.0 }
 0x1b4   :  { %v360_v41 = vsel %vm229_vm1, %v358_v40, 0.0  ;;  %v366_v47 = vsel %vm229_vm1, %v364_v43, 0.0 }
 0x1b5   :  { %361 = vadd.xlane.f32.xlu2 %v360_v41  ;;  %385 = vadd.xlane.f32.xlu0 %v384_v42 }
 0x1ba   :  { %v405_v44 = vpop.permute.xlu2 %404 }
 0x1bb   :  { %v407_v45 = vsel %vm229_vm1, %v405_v44, 0.0  ;;  %v370_v48 = vpop.permute.xlu0 %369  ;;  %v411_v51 = vpop.permute.xlu1 %410 }
 0x1bc   :  { %408 = vadd.xlane.f32.xlu1 %v407_v45  ;;  %v372_v49 = vsel %vm229_vm1, %v370_v48, 0.0  ;;  %v413_v52 = vsel %vm229_vm1, %v411_v51, 0.0 }
 0x1bd   :  { %402 = vadd.xlane.f32.xlu0 %v401_v46  ;;  %367 = vadd.xlane.f32.xlu2 %v366_v47 }
 0x1c5   :  { %373 = vadd.xlane.f32.xlu2 %v372_v49 }
 0x1cd   :  { %396 = vadd.xlane.f32.xlu2 %v395_v50 }
 0x1d5   :  { %414 = vadd.xlane.f32.xlu2 %v413_v52 }
 0x1e6   :  { %v240_v53 = vpop.xlane.xlu1 %239  ;;  %v254_v58 = vpop.xlane.xlu0 %253 }
 0x1e7   :  { %v263_v56 = vsel %vm262_vm2, %v232_v25, %v240_v53 }
 0x1ee   :  { %v261_v54 = vpop.xlane.xlu1 %260 }
 0x1f6   :  { %v287_v55 = vpop.xlane.xlu1 %286 }
 0x1fc   :  { %v247_v57 = vpop.xlane.xlu2 %246 }
 0x1fd   :  { %v265_v59 = vsel %vm264_vm3, %v263_v56, %v247_v57 }
 0x1fe   :  { %v267_v60 = vsel %vm266_vm4, %v265_v59, %v254_v58  ;;  %v380_v61 = vpop.xlane.xlu1 %379 }
 0x1ff   :  { %v269_v62 = vsel %vm268_vm5, %v267_v60, %v261_v54 }
 0x204   :  { %v335_v63 = vpop.xlane.xlu2 %334 }
 0x206   :  { %v301_v0 = vpop.xlane.xlu1 %300 }
 0x20c   :  { %v421_v1 = vpop.xlane.xlu2 %420 }
 0x20f   :  { %v329_v2 = vpop.xlane.xlu1 %328 }
 0x214   :  { %v280_v3 = vpop.xlane.xlu2 %279 }
 0x215   :  { %v309_v4 = vsel %vm262_vm2, %v280_v3, %v287_v55 }
 0x218   :  { %v294_v5 = vpop.xlane.xlu0 %293  ;;  %v341_v6 = vpop.xlane.xlu1 %340 }
 0x219   :  { %v310_v7 = vsel %vm264_vm3, %v309_v4, %v294_v5 }
 0x21a   :  { %v311_v9 = vsel %vm266_vm4, %v310_v7, %v301_v0 }
 0x21c   :  { %v308_v8 = vpop.xlane.xlu2 %307 }
 0x21d   :  { %v312_v10 = vsel %vm268_vm5, %v311_v9, %v308_v8 }
 0x21e   :  { %427 = vrot.lane.b32.xlu2 %v312_v10, %s635_s4 }
 0x220   :  { %v323_v11 = vpop.xlane.xlu0 %322  ;;  %v347_v14 = vpop.xlane.xlu1 %346 }
 0x221   :  { %v348_v12 = vsel %vm262_vm2, %v323_v11, %v329_v2 }
 0x222   :  { %v349_v13 = vsel %vm264_vm3, %v348_v12, %v335_v63 }
 0x223   :  { %v350_v15 = vsel %vm266_vm4, %v349_v13, %v341_v6 }
 0x224   :  { %v351_v16 = vsel %vm268_vm5, %v350_v15, %v347_v14 }
 0x225   :  { %431 = vrot.lane.b32.xlu0 %v351_v16, %s636_s25 }
 0x228   :  { %v362_v17 = vpop.xlane.xlu2 %361  ;;  %v386_v22 = vpop.xlane.xlu0 %385 }
 0x22f   :  { %v409_v28 = vpop.xlane.xlu1 %408 }
 0x230   :  { %v368_v18 = vpop.xlane.xlu2 %367  ;;  %v403_v26 = vpop.xlane.xlu0 %402 }
 0x231   :  { %v387_v19 = vsel %vm262_vm2, %v362_v17, %v368_v18 }
 0x238   :  { %v374_v20 = vpop.xlane.xlu2 %373 }
 0x239   :  { %v388_v21 = vsel %vm264_vm3, %v387_v19, %v374_v20 }
 0x23a   :  { %v389_v23 = vsel %vm266_vm4, %v388_v21, %v380_v61 }
 0x23b   :  { %v390_v24 = vsel %vm268_vm5, %v389_v23, %v386_v22 }
 0x23c   :  { %435 = vrot.lane.b32.xlu1 %v390_v24, %s637_s26 }
 0x240   :  { %v397_v25 = vpop.xlane.xlu2 %396 }
 0x241   :  { %v422_v27 = vsel %vm262_vm2, %v397_v25, %v403_v26 }
 0x242   :  { %v423_v30 = vsel %vm264_vm3, %v422_v27, %v409_v28 }
 0x248   :  { %v415_v29 = vpop.xlane.xlu2 %414 }
 0x249   :  { %v424_v31 = vsel %vm266_vm4, %v423_v30, %v415_v29 }
 0x24a   :  { %v425_v32 = vsel %vm268_vm5, %v424_v31, %v421_v1 }
 0x24b   :  { %439 = vrot.lane.b32.xlu0 %v425_v32, %s638_s27 }
 0x278   :  { %v428_v34 = vpop.permute.xlu2 %427 }
 0x279   :  { %v443_v36 = vsel %vm442_vm6, %v269_v62, %v428_v34 }
 0x297   :  { %v432_v33 = vpop.permute.xlu0 %431 }
 0x298   :  { %v445_v37 = vsel %vm444_vm7, %v443_v36, %v432_v33 }
 0x2ae   :  { %v436_v35 = vpop.permute.xlu1 %435 }
 0x2af   :  { %v447_v38 = vsel %vm446_vm8, %v445_v37, %v436_v35 }
 0x2bd   :  { %v440_v39 = vpop.permute.xlu0 %439 }
 0x2be   :  { %v449_v40 = vsel %vm448_vm9, %v447_v38, %v440_v39 }
 0x2bf   :  { %v450_v41 = vmul.f32 0.25, %v449_v40 }
 0x2c1   :  { %452 = vst.msk [vmem:[#allocation10] sm:$0x3] %vm451_vm10, %v450_v41 }
 0x2c2   :  { %463 = dma.vmem_to_hbm [thread:$0]  %s459_s29, 32, %s461_s8, [#allocation4]  }
 0x2c3   :  { %620 = dma.done.wait [#allocation4], 32  }
 0x2c4   :  { %621 = vsyncadd [#allocation4], 4294967264 }
 0x2c5   :  { %468 = vsyncpa [#allocation3], 1 }
 0x2c6   :  { %469 = vsyncpa [#allocation6], 1 }
 0x2c7   :  { %470 = vsyncpa [#allocation9], 1 }
 0x2c8   :  { %471 = vsyncpa [#allocation4], 1 }

</bundles_post_ra>
